<compile_context>
chip_gen: v7x
topology: tpu7x:2x2x1
jax: 0.10.0
libtpu: 0.0.40
codegen_flags: <defaults>
</compile_context>

<pallas_src>
import jax
import jax.numpy as jnp
from jax.experimental import pallas as pl
from jax.experimental.pallas import tpu as pltpu


def _attention_kernel(w1_ref, w2_ref, v_ref, s_ref, d_ref, dec_ref, o_ref):
    # w1_ref/w2_ref: (H, H)   v_ref: (1, H)
    # s_ref/d_ref:  (G, H, S) dec_ref: (G, H, 1)   o_ref: (G, 1, S)
    w1 = w1_ref[...]
    w2 = w2_ref[...]
    v = v_ref[...]
    G = s_ref.shape[0]

    # Static unroll over the (small) batch group; each iteration is a pair of
    # accumulated (H,H)@(H,S) MXU matmuls + EUP tanh + a (1,H)@(H,S) matmul.
    for g in range(G):
        y = jnp.dot(w1, s_ref[g], preferred_element_type=jnp.float32)
        y = y + jnp.dot(w2, d_ref[g], preferred_element_type=jnp.float32)
        y = y + dec_ref[g]                      # (H,1) broadcast over S lanes (VPU)
        t = jnp.tanh(y)

        logits = jnp.dot(v, t, preferred_element_type=jnp.float32)   # (1, S)

        # Per-batch softmax over S (per-row max fixes the underflow hazard of
        # a global-max shift and keeps the exp argument <= 0).
        m = jnp.max(logits, axis=-1, keepdims=True)
        e = jnp.exp(logits - m)
        denom = jnp.sum(e, axis=-1, keepdims=True)                   # (1, 1)

        # EUP reciprocal (separate VLIW slot) + one Newton step on the VPU.
        r = pl.reciprocal(denom, approx=True)
        r = r * (2.0 - denom * r)

        o_ref[g] = (e * r).astype(o_ref.dtype)


def attention_forward(v, W, static_hidden, dynamic_hidden, decoder_hidden,
                      *, max_group=8):
    """v: (1,1,H), W: (1,H,3H), static/dynamic: (B,H,S), decoder: (B,H) -> (B,1,S)."""
    B, H, S = static_hidden.shape
    f32 = jnp.float32

    v2d = v.reshape(1, H).astype(f32)                 # (1, H)
    Wm = W.reshape(H, 3 * H).astype(f32)
    W1 = Wm[:, :H]                                    # multiplies static
    W2 = Wm[:, H:2 * H]                               # multiplies dynamic
    W3 = Wm[:, 2 * H:]                                # multiplies decoder

    static_f = static_hidden.astype(f32)
    dynamic_f = dynamic_hidden.astype(f32)

    # Decoder projection hoisted to one tiny XLA matmul; enters the kernel as a
    # per-batch (H, 1) column bias (no (H, B*S) slab is ever materialized).
    dec_proj = (decoder_hidden.astype(f32) @ W3.T).reshape(B, H, 1)   # (B, H, 1)

    # Batch-group size: largest divisor of B <= max_group. Amortizes the
    # ~0.35us/grid-step overhead when S*H is small while keeping per-step
    # VMEM bounded; grid stays parallel for v7x megacore sharding.
    G = 1
    for cand in range(min(B, max_group), 0, -1):
        if B % cand == 0:
            G = cand
            break
    grid = (B // G,)

    # Explicit scoped-VMEM limit with headroom for double-buffered tiles.
    blk_bytes = 4 * (2 * H * H + H                      # W1, W2, v (resident)
                     + G * (2 * H * S + H + S))         # static+dynamic+dec+out tiles
    vmem_bytes = int(min(64 * 2 ** 20, max(16 * 2 ** 20, 3 * blk_bytes + (2 << 20))))

    out = pl.pallas_call(
        _attention_kernel,
        out_shape=jax.ShapeDtypeStruct((B, 1, S), f32),
        grid_spec=pltpu.PrefetchScalarGridSpec(
            num_scalar_prefetch=0,
            grid=grid,
            in_specs=[
                pl.BlockSpec((H, H), lambda i: (0, 0)),        # W1 (resident)
                pl.BlockSpec((H, H), lambda i: (0, 0)),        # W2 (resident)
                pl.BlockSpec((1, H), lambda i: (0, 0)),        # v  (resident)
                pl.BlockSpec((G, H, S), lambda i: (i, 0, 0)),  # static tile
                pl.BlockSpec((G, H, S), lambda i: (i, 0, 0)),  # dynamic tile
                pl.BlockSpec((G, H, 1), lambda i: (i, 0, 0)),  # decoder bias cols
            ],
            out_specs=pl.BlockSpec((G, 1, S), lambda i: (i, 0, 0)),
        ),
        compiler_params=pltpu.CompilerParams(
            dimension_semantics=("parallel",),
            vmem_limit_bytes=vmem_bytes,
        ),
    )(W1, W2, v2d, static_f, dynamic_f, dec_proj)

    return out                                            # (B, 1, S)


def _reference(v, W, static_hidden, dynamic_hidden, decoder_hidden):
    B, H, S = static_hidden.shape
    hidden = jnp.concatenate(
        [static_hidden, dynamic_hidden,
         jnp.broadcast_to(decoder_hidden[:, :, None], (B, H, S))], axis=1)
    Wb = jnp.broadcast_to(W, (B, H, 3 * H))
    vb = jnp.broadcast_to(v, (B, 1, H))
    logits = jnp.einsum('bih,bhs->bis', vb, jnp.tanh(
        jnp.einsum('bhk,bks->bhs', Wb, hidden)))
    return jax.nn.softmax(logits, axis=2)


def _run_case(key, B, H, S, atol=1e-4, rtol=1e-4):
    kv, kw, ks, kd, kdec = jax.random.split(key, 5)
    # Module declares zero-init params; use small random values so the compute
    # path is actually exercised.
    v_param = 0.1 * jax.random.normal(kv, (1, 1, H), dtype=jnp.float32)
    W_param = 0.1 * jax.random.normal(kw, (1, H, 3 * H), dtype=jnp.float32)
    static_hidden = jax.random.normal(ks, (B, H, S), dtype=jnp.float32)
    dynamic_hidden = jax.random.normal(kd, (B, H, S), dtype=jnp.float32)
    decoder_hidden = jax.random.normal(kdec, (B, H), dtype=jnp.float32)

    out = attention_forward(v_param, W_param, static_hidden,
                            dynamic_hidden, decoder_hidden)
    out = jax.block_until_ready(out)

    ref = _reference(v_param, W_param, static_hidden,
                     dynamic_hidden, decoder_hidden)
    assert out.shape == (B, 1, S)
    err = float(jnp.max(jnp.abs(out - ref)))
    assert jnp.allclose(out, ref, atol=atol, rtol=rtol), err


if __name__ == "__main__":
    key = jax.random.PRNGKey(0)
    k1, k2 = jax.random.split(key)

    # Small case matching the module-implied shapes (B=2, H=32, S=8).
    _run_case(k1, B=2, H=32, S=8)

    # A lane/sublane-aligned case so tiling / per-batch softmax layout is
    # actually exercised beyond a single (8,128) tile.
    _run_case(k2, B=4, H=64, S=256)

    print("KERNEL_OK")
</pallas_src>

<mosaic_0001>
module attributes {stable_mosaic.version = 11 : i64} {
  func.func @_attention_kernel(%arg0: i32, %arg1: memref<32x32xf32, #tpu.memory_space<vmem>>, %arg2: memref<32x32xf32, #tpu.memory_space<vmem>>, %arg3: memref<1x32xf32, #tpu.memory_space<vmem>>, %arg4: memref<2x32x8xf32, #tpu.memory_space<vmem>>, %arg5: memref<2x32x8xf32, #tpu.memory_space<vmem>>, %arg6: memref<2x32x1xf32, #tpu.memory_space<vmem>>, %arg7: memref<2x1x8xf32, #tpu.memory_space<vmem>>) attributes {dimension_semantics = [#tpu.dimension_semantics<parallel>], iteration_bounds = array<i64: 1>, scalar_prefetch = 0 : i64, scratch_operands = 0 : i64, tpu.core_type = #tpu.core_type<tc>, window_params = [{pipeline_mode = #tpu.pipeline_mode<synchronous>, transform_indices = @transform_0, window_bounds = array<i64: 32, 32>}, {pipeline_mode = #tpu.pipeline_mode<synchronous>, transform_indices = @transform_1, window_bounds = array<i64: 32, 32>}, {pipeline_mode = #tpu.pipeline_mode<synchronous>, transform_indices = @transform_2, window_bounds = array<i64: 1, 32>}, {transform_indices = @transform_3, window_bounds = array<i64: 2, 32, 8>}, {transform_indices = @transform_4, window_bounds = array<i64: 2, 32, 8>}, {transform_indices = @transform_5, window_bounds = array<i64: 2, 32, 1>}, {transform_indices = @transform_6, window_bounds = array<i64: 2, 1, 8>}]} {
    %c0 = arith.constant 0 : index
    %c0_0 = arith.constant 0 : index
    %0 = vector.load %arg1[%c0, %c0_0] : memref<32x32xf32, #tpu.memory_space<vmem>>, vector<32x32xf32>
    %c0_1 = arith.constant 0 : index
    %c0_2 = arith.constant 0 : index
    %1 = vector.load %arg2[%c0_1, %c0_2] : memref<32x32xf32, #tpu.memory_space<vmem>>, vector<32x32xf32>
    %c0_3 = arith.constant 0 : index
    %c0_4 = arith.constant 0 : index
    %2 = vector.load %arg3[%c0_3, %c0_4] : memref<1x32xf32, #tpu.memory_space<vmem>>, vector<1x32xf32>
    %c0_5 = arith.constant 0 : index
    %c0_6 = arith.constant 0 : index
    %c0_7 = arith.constant 0 : index
    %3 = vector.load %arg4[%c0_5, %c0_6, %c0_7] : memref<2x32x8xf32, #tpu.memory_space<vmem>>, vector<1x32x8xf32>
    %4 = vector.shape_cast %3 : vector<1x32x8xf32> to vector<32x8xf32>
    %cst = arith.constant dense<0.000000e+00> : vector<32x8xf32>
    %5 = tpu.matmul %0, %4, %cst {dimension_numbers = #tpu.dot_dimension_numbers<[1], [0], [0], [1], [0, 0, 1, 1], [], []>} : vector<32x32xf32>, vector<32x8xf32>, vector<32x8xf32> -> vector<32x8xf32>
    %c0_8 = arith.constant 0 : index
    %c0_9 = arith.constant 0 : index
    %c0_10 = arith.constant 0 : index
    %6 = vector.load %arg5[%c0_8, %c0_9, %c0_10] : memref<2x32x8xf32, #tpu.memory_space<vmem>>, vector<1x32x8xf32>
    %7 = vector.shape_cast %6 : vector<1x32x8xf32> to vector<32x8xf32>
    %cst_11 = arith.constant dense<0.000000e+00> : vector<32x8xf32>
    %8 = tpu.matmul %1, %7, %cst_11 {dimension_numbers = #tpu.dot_dimension_numbers<[1], [0], [0], [1], [0, 0, 1, 1], [], []>} : vector<32x32xf32>, vector<32x8xf32>, vector<32x8xf32> -> vector<32x8xf32>
    %9 = arith.addf %5, %8 : vector<32x8xf32>
    %c0_12 = arith.constant 0 : index
    %c0_13 = arith.constant 0 : index
    %c0_14 = arith.constant 0 : index
    %10 = vector.load %arg6[%c0_12, %c0_13, %c0_14] : memref<2x32x1xf32, #tpu.memory_space<vmem>>, vector<1x32x1xf32>
    %11 = vector.shape_cast %10 : vector<1x32x1xf32> to vector<32x1xf32>
    %12 = vector.broadcast %11 : vector<32x1xf32> to vector<32x8xf32>
    %13 = arith.addf %9, %12 : vector<32x8xf32>
    %14 = math.tanh %13 : vector<32x8xf32>
    %cst_15 = arith.constant dense<0.000000e+00> : vector<1x8xf32>
    %15 = tpu.matmul %2, %14, %cst_15 {dimension_numbers = #tpu.dot_dimension_numbers<[1], [0], [0], [1], [0, 0, 1, 1], [], []>} : vector<1x32xf32>, vector<32x8xf32>, vector<1x8xf32> -> vector<1x8xf32>
    %cst_16 = arith.constant dense<0xFF800000> : vector<1xf32>
    %16 = vector.multi_reduction <maximumf>, %15, %cst_16 [1] : vector<1x8xf32> to vector<1xf32>
    %17 = vector.shape_cast %16 : vector<1xf32> to vector<1x1xf32>
    %18 = vector.broadcast %17 : vector<1x1xf32> to vector<1x8xf32>
    %19 = arith.subf %15, %18 : vector<1x8xf32>
    %20 = math.exp %19 : vector<1x8xf32>
    %cst_17 = arith.constant dense<0.000000e+00> : vector<1xf32>
    %21 = vector.multi_reduction <add>, %20, %cst_17 [1] : vector<1x8xf32> to vector<1xf32>
    %22 = vector.shape_cast %21 : vector<1xf32> to vector<1x1xf32>
    %23 = tpu.reciprocal %22 {approx = true} : vector<1x1xf32> -> vector<1x1xf32>
    %24 = arith.mulf %22, %23 : vector<1x1xf32>
    %cst_18 = arith.constant 2.000000e+00 : f32
    %25 = vector.broadcast %cst_18 : f32 to vector<1x1xf32>
    %26 = arith.subf %25, %24 : vector<1x1xf32>
    %27 = arith.mulf %23, %26 : vector<1x1xf32>
    %28 = vector.broadcast %27 : vector<1x1xf32> to vector<1x8xf32>
    %29 = arith.mulf %20, %28 : vector<1x8xf32>
    %c0_19 = arith.constant 0 : index
    %c0_20 = arith.constant 0 : index
    %c0_21 = arith.constant 0 : index
    %30 = vector.load %arg7[%c0_19, %c0_20, %c0_21] : memref<2x1x8xf32, #tpu.memory_space<vmem>>, vector<1x1x8xf32>
    %31 = vector.shape_cast %30 : vector<1x1x8xf32> to vector<1x8xf32>
    %32 = vector.shape_cast %29 : vector<1x8xf32> to vector<1x1x8xf32>
    tpu.vector_store %arg7[%c0_19, %c0_20, %c0_21], %32 {strides = array<i32>} : memref<2x1x8xf32, #tpu.memory_space<vmem>>, vector<1x1x8xf32>,
    %c1 = arith.constant 1 : index
    %c0_22 = arith.constant 0 : index
    %c0_23 = arith.constant 0 : index
    %33 = vector.load %arg4[%c1, %c0_22, %c0_23] : memref<2x32x8xf32, #tpu.memory_space<vmem>>, vector<1x32x8xf32>
    %34 = vector.shape_cast %33 : vector<1x32x8xf32> to vector<32x8xf32>
    %cst_24 = arith.constant dense<0.000000e+00> : vector<32x8xf32>
    %35 = tpu.matmul %0, %34, %cst_24 {dimension_numbers = #tpu.dot_dimension_numbers<[1], [0], [0], [1], [0, 0, 1, 1], [], []>} : vector<32x32xf32>, vector<32x8xf32>, vector<32x8xf32> -> vector<32x8xf32>
    %c1_25 = arith.constant 1 : index
    %c0_26 = arith.constant 0 : index
    %c0_27 = arith.constant 0 : index
    %36 = vector.load %arg5[%c1_25, %c0_26, %c0_27] : memref<2x32x8xf32, #tpu.memory_space<vmem>>, vector<1x32x8xf32>
    %37 = vector.shape_cast %36 : vector<1x32x8xf32> to vector<32x8xf32>
    %cst_28 = arith.constant dense<0.000000e+00> : vector<32x8xf32>
    %38 = tpu.matmul %1, %37, %cst_28 {dimension_numbers = #tpu.dot_dimension_numbers<[1], [0], [0], [1], [0, 0, 1, 1], [], []>} : vector<32x32xf32>, vector<32x8xf32>, vector<32x8xf32> -> vector<32x8xf32>
    %39 = arith.addf %35, %38 : vector<32x8xf32>
    %c1_29 = arith.constant 1 : index
    %c0_30 = arith.constant 0 : index
    %c0_31 = arith.constant 0 : index
    %40 = vector.load %arg6[%c1_29, %c0_30, %c0_31] : memref<2x32x1xf32, #tpu.memory_space<vmem>>, vector<1x32x1xf32>
    %41 = vector.shape_cast %40 : vector<1x32x1xf32> to vector<32x1xf32>
    %42 = vector.broadcast %41 : vector<32x1xf32> to vector<32x8xf32>
    %43 = arith.addf %39, %42 : vector<32x8xf32>
    %44 = math.tanh %43 : vector<32x8xf32>
    %cst_32 = arith.constant dense<0.000000e+00> : vector<1x8xf32>
    %45 = tpu.matmul %2, %44, %cst_32 {dimension_numbers = #tpu.dot_dimension_numbers<[1], [0], [0], [1], [0, 0, 1, 1], [], []>} : vector<1x32xf32>, vector<32x8xf32>, vector<1x8xf32> -> vector<1x8xf32>
    %cst_33 = arith.constant dense<0xFF800000> : vector<1xf32>
    %46 = vector.multi_reduction <maximumf>, %45, %cst_33 [1] : vector<1x8xf32> to vector<1xf32>
    %47 = vector.shape_cast %46 : vector<1xf32> to vector<1x1xf32>
    %48 = vector.broadcast %47 : vector<1x1xf32> to vector<1x8xf32>
    %49 = arith.subf %45, %48 : vector<1x8xf32>
    %50 = math.exp %49 : vector<1x8xf32>
    %cst_34 = arith.constant dense<0.000000e+00> : vector<1xf32>
    %51 = vector.multi_reduction <add>, %50, %cst_34 [1] : vector<1x8xf32> to vector<1xf32>
    %52 = vector.shape_cast %51 : vector<1xf32> to vector<1x1xf32>
    %53 = tpu.reciprocal %52 {approx = true} : vector<1x1xf32> -> vector<1x1xf32>
    %54 = arith.mulf %52, %53 : vector<1x1xf32>
    %cst_35 = arith.constant 2.000000e+00 : f32
    %55 = vector.broadcast %cst_35 : f32 to vector<1x1xf32>
    %56 = arith.subf %55, %54 : vector<1x1xf32>
    %57 = arith.mulf %53, %56 : vector<1x1xf32>
    %58 = vector.broadcast %57 : vector<1x1xf32> to vector<1x8xf32>
    %59 = arith.mulf %50, %58 : vector<1x8xf32>
    %c1_36 = arith.constant 1 : index
    %c0_37 = arith.constant 0 : index
    %c0_38 = arith.constant 0 : index
    %60 = vector.load %arg7[%c1_36, %c0_37, %c0_38] : memref<2x1x8xf32, #tpu.memory_space<vmem>>, vector<1x1x8xf32>
    %61 = vector.shape_cast %60 : vector<1x1x8xf32> to vector<1x8xf32>
    %62 = vector.shape_cast %59 : vector<1x8xf32> to vector<1x1x8xf32>
    tpu.vector_store %arg7[%c1_36, %c0_37, %c0_38], %62 {strides = array<i32>} : memref<2x1x8xf32, #tpu.memory_space<vmem>>, vector<1x1x8xf32>,
    return
  }
  func.func @transform_0(%arg0: i32) -> (i32, i32) {
    %c0_i32 = arith.constant 0 : i32
    %c0_i32_0 = arith.constant 0 : i32
    %c0_i32_1 = arith.constant 0 : i32
    return %c0_i32, %c0_i32_0 : i32, i32
  }
  func.func @transform_1(%arg0: i32) -> (i32, i32) {
    %c0_i32 = arith.constant 0 : i32
    %c0_i32_0 = arith.constant 0 : i32
    %c0_i32_1 = arith.constant 0 : i32
    return %c0_i32, %c0_i32_0 : i32, i32
  }
  func.func @transform_2(%arg0: i32) -> (i32, i32) {
    %c0_i32 = arith.constant 0 : i32
    %c0_i32_0 = arith.constant 0 : i32
    %c0_i32_1 = arith.constant 0 : i32
    return %c0_i32, %c0_i32_0 : i32, i32
  }
  func.func @transform_3(%arg0: i32) -> (i32, i32, i32) {
    %c0_i32 = arith.constant 0 : i32
    %c0_i32_0 = arith.constant 0 : i32
    %c0_i32_1 = arith.constant 0 : i32
    return %arg0, %c0_i32, %c0_i32_0 : i32, i32, i32
  }
  func.func @transform_4(%arg0: i32) -> (i32, i32, i32) {
    %c0_i32 = arith.constant 0 : i32
    %c0_i32_0 = arith.constant 0 : i32
    %c0_i32_1 = arith.constant 0 : i32
    return %arg0, %c0_i32, %c0_i32_0 : i32, i32, i32
  }
  func.func @transform_5(%arg0: i32) -> (i32, i32, i32) {
    %c0_i32 = arith.constant 0 : i32
    %c0_i32_0 = arith.constant 0 : i32
    %c0_i32_1 = arith.constant 0 : i32
    return %arg0, %c0_i32, %c0_i32_0 : i32, i32, i32
  }
  func.func @transform_6(%arg0: i32) -> (i32, i32, i32) {
    %c0_i32 = arith.constant 0 : i32
    %c0_i32_0 = arith.constant 0 : i32
    %c0_i32_1 = arith.constant 0 : i32
    return %arg0, %c0_i32, %c0_i32_0 : i32, i32, i32
  }
}

</mosaic_0001>

<bundles_post_ra>
// kernel: tpu_custom_call.1
= control target key start
LH: loop header
LB: loop body
LE: loop exit
PB: predicated region body
PF: predicated region fallthrough
CT: control target
= control target key end

     0   :  { %vm41_vm0 = vcmask 261120   ;;  %v931_v6 = vmov 0   ;;  %s1144_s0 = inlined_call_operand.vmem [shape: f32[32,32], index: 0, kind: input, shape index: {}]   ;;  %s1145_s1 = inlined_call_operand.vmem [shape: f32[32,32], index: 1, kind: input, shape index: {}]   ;;  %s1146_s2 = inlined_call_operand.vmem [shape: f32[1,32], index: 2, kind: input, shape index: {}]   ;;  %s1147_s3 = inlined_call_operand.vmem [shape: f32[2,32,8], index: 3, kind: input, shape index: {}]   ;;  %s1148_s4 = inlined_call_operand.vmem [shape: f32[2,32,8], index: 4, kind: input, shape index: {}]   ;;  %s1149_s5 = inlined_call_operand.vmem [shape: f32[2,32,1], index: 5, kind: input, shape index: {}]   ;;  %s1150_s6 = inlined_call_operand.hbm [shape: f32[2,1,8], index: 6, kind: output, shape index: {}]  }
   0x1   :  { %v37_v0 = vld [vmem:[%s1148_s4] sm:$0xff]  ;;  %v38_v1 = vld [vmem:[%s1148_s4 + $0x8] sm:$0xff]  ;;  %v39_v2 = vld [vmem:[%s1148_s4 + $0x10] sm:$0xff]  ;;  %881 = vset.pattern.permute.xlu0 %v931_v6  ;;  %882 = vset.pattern.permute.xlu1 %v931_v6 }
   0x2   :  { %v822_v3 = vpack.c.bf16 %v38_v1, %v37_v0  ;;  %v40_v4 = vld [vmem:[%s1148_s4 + $0x18] sm:$0xff]  ;;  %v988_v5 = vld [vmem:[%s1145_s1] sm:$0xff]  ;;  %v34_v9 = vld [vmem:[%s1147_s3 + $0x8] sm:$0xff] }
   0x3   :  { %v826_v7 = vpack.c.bf16 %v40_v4, %v39_v2  ;;  %752 = vmatprep.mubr.msk.f32.mxu0 %vm41_vm0, %v988_v5  ;;  %v33_v8 = vld [vmem:[%s1147_s3] sm:$0xff]  ;;  %v238_v12 = vld [vmem:[%s1149_s5 + $0x10] sm:$0xff]  ;;  %v36_v14 = vld [vmem:[%s1147_s3 + $0x18] sm:$0xff] }
   0x4   :  { %823 = vmatprep.subr.bf16.mxu0 %v822_v3  ;;  %v830_v10 = vpack.c.bf16 %v34_v9, %v33_v8  ;;  %v236_v11 = vld [vmem:[%s1149_s5] sm:$0xff]  ;;  %v35_v13 = vld [vmem:[%s1147_s3 + $0x10] sm:$0xff]  ;;  %252 = vperm.xlu1 %882, %v238_v12   ;;  %v237_v15 = vld [vmem:[%s1149_s5 + $0x8] sm:$0xff] }
   0x5   :  { %825 = vmatpush3.bf16.msra.mxu0 %v822_v3  ;;  %242 = vperm.xlu0 %881, %v236_v11   ;;  %v239_v16 = vld [vmem:[%s1149_s5 + $0x18] sm:$0xff]  ;;  %v1019_v17 = vld [vmem:[%s1145_s1 + $0x8] sm:$0xff] }
   0x6   :  { %827 = vmatprep.subr.bf16.mxu0 %v826_v7 }
   0x9   :  { %829 = vmatpush3.bf16.msra.mxu0 %v826_v7 }
   0xa   :  { %11 = vsyncpa [#allocation3], 0  ;;  %831 = vmatprep.subr.bf16.mxu0 %v830_v10  ;;  %v1024_v18 = vld [vmem:[%s1145_s1 + $0x10] sm:$0xff]  ;;  %v834_v19 = vpack.c.bf16 %v36_v14, %v35_v13  ;;  %247 = vperm.xlu0 %881, %v237_v15   ;;  %v697_v20 = vld [vmem:[%s1149_s5 + $0x20] sm:$0xff]  ;;  %v932_v29 = vmov 0.0|0.0   ;;  %vm933_vm1 = vmmov 0  }
   0xb   :  { %257 = vperm.xlu1 %882, %v239_v16   ;;  %v698_v21 = vld [vmem:[%s1149_s5 + $0x28] sm:$0xff]  ;;  %v1039_v22 = vld [vmem:[%s1145_s1 + $0x18] sm:$0xff]  ;;  %v1044_v23 = vld [vmem:[%s1144_s0] sm:$0xff]  ;;  %838 = vmatprep.subr.bf16.mxu1 %v932_v29  ;;  %v934_v30 = vmov 0.0   ;;  %vm341_vm2 = vcmask 57344  }
   0xc   :  { %753 = vmatmul.mubr.msk.f32.vlgmr.msra.gmra.mrb[0].mxu0 %vm41_vm0, %v1019_v17  ;;  %v699_v24 = vld [vmem:[%s1149_s5 + $0x30] sm:$0xff]  ;;  %v700_v25 = vld [vmem:[%s1149_s5 + $0x38] sm:$0xff]  ;;  %v1059_v26 = vld [vmem:[%s1144_s0 + $0x8] sm:$0xff]  ;;  %780 = vmatprep.mubr.msk.f32.mxu1 %vm933_vm1, %v934_v30 }
   0xd   :  { %833 = vmatpush3.bf16.msra.mxu0 %v830_v10  ;;  %755 = vmatprep.mubr.msk.f32.mxu0 %vm41_vm0, %v1024_v18  ;;  %v1064_v27 = vld [vmem:[%s1144_s0 + $0x10] sm:$0xff]  ;;  %v1073_v28 = vld [vmem:[%s1144_s0 + $0x18] sm:$0xff]  ;;  %v685_v46 = vld [vmem:[%s1148_s4 + $0x20] sm:$0xff] }
   0xe   :  { %835 = vmatprep.subr.bf16.mxu0 %v834_v19  ;;  %544 = vperm.xlu0 %881, %v697_v20   ;;  %v686_v47 = vld [vmem:[%s1148_s4 + $0x28] sm:$0xff]  ;;  %v687_v52 = vld [vmem:[%s1148_s4 + $0x30] sm:$0xff]  ;;  %v688_v53 = vld [vmem:[%s1148_s4 + $0x38] sm:$0xff] }
   0xf   :  { %549 = vperm.xlu1 %882, %v698_v21   ;;  %v844_v50 = vpack.c.bf16 %v686_v47, %v685_v46  ;;  %v32_v54 = vld [vmem:[%s1146_s2] sm:$0x1]  ;;  %v848_v55 = vpack.c.bf16 %v688_v53, %v687_v52  ;;  %v682_v57 = vld [vmem:[%s1147_s3 + $0x28] sm:$0xff]  ;;  %v683_v59 = vld [vmem:[%s1147_s3 + $0x30] sm:$0xff] }
  0x10   :  { %756 = vmatmul.mubr.msk.f32.gmra.mrb[2].mxu0 %vm41_vm0, %v1039_v22  ;;  %v681_v56 = vld [vmem:[%s1147_s3 + $0x20] sm:$0xff]  ;;  %v684_v60 = vld [vmem:[%s1147_s3 + $0x38] sm:$0xff]  ;;  %s935_s3 = smov [#allocation2]  }
  0x11   :  { %837 = vmatpush3.bf16.msra.mxu0 %v834_v19  ;;  %766 = vmatprep.mubr.msk.f32.mxu0 %vm41_vm0, %v1044_v23  ;;  %v852_v58 = vpack.c.bf16 %v682_v57, %v681_v56  ;;  %v856_v61 = vpack.c.bf16 %v684_v60, %v683_v59  ;;  %s661_s10 = sshll.u32 %s935_s3, 4  ;;  %s662_s10 = int_to_ptr.vmem [resolvable:$true] %s661_s10 }
  0x12   :  { %554 = vperm.xlu0 %881, %v699_v24   ;;  %860 = vmatprep.subr.bf16.mxu0 %v932_v29  ;;  %s907_s11 = scalar_lea.vmem %s662_s10, 32  ;;  %p912_p1 = scmp.lt.s32.totalorder %s662_s10, %s662_s10 }
  0x13   :  { %559 = vperm.xlu1 %882, %v700_v25   ;;  %p908_p0 = scmp.ne.s32.totalorder %s662_s10, %s907_s11  ;;  %p913_p2 = scmp.lt.s32.totalorder %s907_s11, %s907_s11 }
  0x14   :  { %767 = vmatmul.mubr.msk.f32.vlgmr.msra.gmra.mrb[0].mxu0 %vm41_vm0, %v1059_v26 }
  0x15   :  { %769 = vmatprep.mubr.msk.f32.mxu0 %vm41_vm0, %v1064_v27  ;;  %p914_p3 = por %p913_p2, %p912_p1 }
  0x17   :  { %p915_p4 = pnand %p914_p3, %p908_p0 }
  0x18   :  { %770 = vmatmul.mubr.msk.f32.gmra.mrb[2].mxu0 %vm41_vm0, %v1073_v28 }
  0x19   :  { %819 = vmatprep.mubr.msk.f32.mxu0 %vm933_vm1, %v934_v30 }
  0x83   :  { %v253_v32 = vpop.permute.xlu1 %252 }
  0x84   :  { %v243_v31 = vpop.permute.xlu0 %242 }
  0x89   :  { %v248_v33 = vpop.permute.xlu0 %247 }
  0x8a   :  { %v258_v38 = vpop.permute.xlu1 %257 }
  0x8d   :  { %v545_v2 = vpop.permute.xlu0 %544 }
  0x8e   :  { %v550_v1 = vpop.permute.xlu1 %549 }
  0x91   :  { %v555_v9 = vpop.permute.xlu0 %554 }
  0x92   :  { %v560_v7 = vpop.permute.xlu1 %559 }
  0xe7   :  { %v768_v34 = vpop.f32.mrb[0].mxu0 }
  0xe8   :  { %v261_v35 = vadd.f32 %v768_v34, %v248_v33  ;;  %v217_v36 = vpop.f32.mrb[1].mxu0 }
  0xe9   :  { %v260_v37 = vadd.f32 %v243_v31, %v217_v36 }
  0xea   :  { %883 = vtanh.f32 %v261_v35 }
  0xeb   :  { %885 = vtanh.f32 %v260_v37  ;;  %v771_v39 = vpop.f32.mrb[2].mxu0 }
  0xec   :  { %v263_v40 = vadd.f32 %v771_v39, %v258_v38  ;;  %v227_v41 = vpop.f32.mrb[3].mxu0 }
  0xed   :  { %v262_v42 = vadd.f32 %v253_v32, %v227_v41 }
  0xee   :  { %887 = vtanh.f32 %v263_v40 }
  0xef   :  { %889 = vtanh.f32 %v262_v42 }
  0xf4   :  { %v884_v43 = vpop.eup %883 }
  0xf5   :  { %v886_v44 = vpop.eup %885 }
  0xf6   :  { %v839_v45 = vpack.c.bf16 %v884_v43, %v886_v44 }
  0xf8   :  { %v888_v48 = vpop.eup %887  ;;  %840 = vmatpush3.bf16.msra.mxu1 %v839_v45 }
  0xf9   :  { %v890_v49 = vpop.eup %889  ;;  %841 = vmatprep.subr.bf16.mxu1 %v932_v29 }
  0xfa   :  { %v842_v51 = vpack.c.bf16 %v888_v48, %v890_v49 }
  0xfc   :  { %843 = vmatpush3.bf16.msra.mxu1 %v842_v51 }
  0xfd   :  { %845 = vmatprep.subr.bf16.mxu1 %v844_v50 }
  0xff   :  { %781 = vmatmul.mubr.msk.f32.vlgmr.msra.gmra.mrb[0].mxu1 %vm41_vm0, %v32_v54 }
 0x100   :  { %847 = vmatpush3.bf16.msra.mxu1 %v844_v50  ;;  %791 = vmatprep.mubr.msk.f32.mxu1 %vm41_vm0, %v988_v5 }
 0x101   :  { %849 = vmatprep.subr.bf16.mxu1 %v848_v55 }
 0x104   :  { %851 = vmatpush3.bf16.msra.mxu1 %v848_v55 }
 0x105   :  { %853 = vmatprep.subr.bf16.mxu1 %v852_v58 }
 0x107   :  { %792 = vmatmul.mubr.msk.f32.vlgmr.msra.gmra.mrb[2].mxu1 %vm41_vm0, %v1019_v17 }
 0x108   :  { %855 = vmatpush3.bf16.msra.mxu1 %v852_v58  ;;  %794 = vmatprep.mubr.msk.f32.mxu1 %vm41_vm0, %v1024_v18 }
 0x109   :  { %857 = vmatprep.subr.bf16.mxu1 %v856_v61 }
 0x10b   :  { %795 = vmatmul.mubr.msk.f32.gmra.mrb[4].mxu1 %vm41_vm0, %v1039_v22 }
 0x10c   :  { %859 = vmatpush3.bf16.msra.mxu1 %v856_v61  ;;  %805 = vmatprep.mubr.msk.f32.mxu1 %vm41_vm0, %v1044_v23 }
 0x10f   :  { %806 = vmatmul.mubr.msk.f32.vlgmr.msra.gmra.mrb[2].mxu1 %vm41_vm0, %v1059_v26 }
 0x110   :  { %808 = vmatprep.mubr.msk.f32.mxu1 %vm41_vm0, %v1064_v27 }
 0x113   :  { %809 = vmatmul.mubr.msk.f32.gmra.mrb[4].mxu1 %vm41_vm0, %v1073_v28 }
 0x1d2   :  { %v337_v62 = vpop.f32.mrb[0].mxu1 }
 0x1d3   :  { %v782_v63 = vpop.f32.mrb[1].mxu1  ;;  %v342_v0 = vsel %vm341_vm2, %v337_v62, -inf }
 0x1d4   :  { %343 = vmax.xlane.f32.xlu0 %v342_v0 }
 0x1e2   :  { %v807_v3 = vpop.f32.mrb[2].mxu1 }
 0x1e3   :  { %v563_v4 = vadd.f32 %v807_v3, %v550_v1  ;;  %v518_v5 = vpop.f32.mrb[3].mxu1 }
 0x1e4   :  { %v562_v6 = vadd.f32 %v545_v2, %v518_v5 }
 0x1e5   :  { %891 = vtanh.f32 %v563_v4 }
 0x1e6   :  { %893 = vtanh.f32 %v562_v6  ;;  %v810_v8 = vpop.f32.mrb[4].mxu1 }
 0x1e7   :  { %v565_v10 = vadd.f32 %v810_v8, %v560_v7  ;;  %v528_v11 = vpop.f32.mrb[5].mxu1 }
 0x1e8   :  { %v564_v12 = vadd.f32 %v555_v9, %v528_v11 }
 0x1e9   :  { %895 = vtanh.f32 %v565_v10 }
 0x1ea   :  { %897 = vtanh.f32 %v564_v12 }
 0x1ef   :  { %v892_v13 = vpop.eup %891 }
 0x1f0   :  { %v894_v14 = vpop.eup %893 }
 0x1f1   :  { %v861_v15 = vpack.c.bf16 %v892_v13, %v894_v14 }
 0x1f3   :  { %v896_v16 = vpop.eup %895  ;;  %862 = vmatpush3.bf16.msra.mxu0 %v861_v15 }
 0x1f4   :  { %v898_v17 = vpop.eup %897  ;;  %863 = vmatprep.subr.bf16.mxu0 %v932_v29 }
 0x1f5   :  { %v864_v18 = vpack.c.bf16 %v896_v16, %v898_v17 }
 0x1f7   :  { %865 = vmatpush3.bf16.msra.mxu0 %v864_v18 }
 0x1fa   :  { %820 = vmatmul.mubr.msk.f32.vlgmr.msra.gmra.mrb[4].mxu0 %vm41_vm0, %v32_v54 }
 0x261   :  { %v344_v19 = vpop.xlane.xlu0 %343 }
 0x262   :  { %v345_v20 = vsub.f32 %v337_v62, %v344_v19 }
 0x264   :  { %v346_v21 = vmul.f32 1.442695, %v345_v20 }
 0x266   :  { %899 = vpow2.f32 %v346_v21 }
 0x270   :  { %v900_v22 = vpop.eup %899 }
 0x271   :  { %v348_v23 = vsel %vm341_vm2, %v900_v22, 0.0 }
 0x272   :  { %349 = vadd.xlane.f32.xlu0 %v348_v23 }
 0x2cd   :  { %v636_v24 = vpop.f32.mrb[4].mxu0 }
 0x2ce   :  { %v821_v25 = vpop.f32.mrb[5].mxu0  ;;  %v640_v26 = vsel %vm341_vm2, %v636_v24, -inf }
 0x2cf   :  { %641 = vmax.xlane.f32.xlu1 %v640_v26 }
 0x2ff   :  { %v350_v27 = vpop.xlane.xlu0 %349 }
 0x300   :  { %901 = vrcp.f32 %v350_v27 }
 0x30a   :  { %v902_v28 = vpop.eup %901 }
 0x30b   :  { %v352_v29 = vmul.f32 %v902_v28, %v350_v27 }
 0x30d   :  { %v353_v30 = vsub.f32 2.0, %v352_v29 }
 0x30f   :  { %v354_v31 = vmul.f32 %v902_v28, %v353_v30 }
 0x311   :  { %v355_v32 = vmul.f32 %v900_v22, %v354_v31 }
 0x313   :  { %356 = vst.msk [vmem:[#allocation2] sm:$0x1] %vm341_vm2, %v355_v32 }
 0x35c   :  { %v642_v33 = vpop.xlane.xlu1 %641 }
 0x35d   :  { %v643_v34 = vsub.f32 %v636_v24, %v642_v33 }
 0x35f   :  { %v644_v35 = vmul.f32 1.442695, %v643_v34 }
 0x361   :  { %903 = vpow2.f32 %v644_v35 }
 0x36b   :  { %v904_v36 = vpop.eup %903 }
 0x36c   :  { %v646_v37 = vsel %vm341_vm2, %v904_v36, 0.0 }
 0x36d   :  { %647 = vadd.xlane.f32.xlu0 %v646_v37 }
 0x3fa   :  { %v648_v38 = vpop.xlane.xlu0 %647 }
 0x3fb   :  { %905 = vrcp.f32 %v648_v38 }
 0x405   :  { %v906_v39 = vpop.eup %905 }
 0x406   :  { %v650_v40 = vmul.f32 %v906_v39, %v648_v38 }
 0x408   :  { %v651_v41 = vsub.f32 2.0, %v650_v40 }
 0x40a   :  { %v652_v42 = vmul.f32 %v906_v39, %v651_v41 }
 0x40c   :  { %v653_v43 = vmul.f32 %v904_v36, %v652_v42 }
 0x40e   :  { %655 = vst.msk [vmem:[#allocation2 + $0x1] sm:$0x1] %vm341_vm2, %v653_v43 }
 0x40f   :  { %918 = shalt.err (!%p915_p4)
}
 0x410   :  { %s919_s14 = scalar_lea.hbm %s1150_s6, 32 }
 0x411   :  { %p920_p5 = scmp.ne.s32.totalorder %s1150_s6, %s919_s14  ;;  %p923_p6 = scmp.lt.u32.totalorder %s919_s14, %s1150_s6 }
 0x413   :  { %p925_p7 = pnand %p923_p6, %p920_p5 }
 0x415   :  { %928 = shalt.err (!%p925_p7)
}
 0x416   :  { %s936_s5 = smov 16   ;;  %s937_s18 = smov 1  }
 0x417   :  { %667 = dma.vmem_to_hbm [thread:$0]  %s662_s10, 32, %s1150_s6, [#allocation3], %s936_s5, %s936_s5, %s937_s18  }
 0x418   :  { %929 = dma.done.wait [#allocation3], 32  }
 0x419   :  { %930 = vsyncadd [#allocation3], 4294967264 }
 0x41a   :  { %671 = vsyncpa [#allocation3], 1 }

</bundles_post_ra>
